<compile_context>
chip_gen: v7x
topology: tpu7x:2x2x1
jax: 0.10.0
libtpu: 0.0.40
codegen_flags: <defaults>
</compile_context>

<pallas_src>
import functools
import math

import jax
import jax.numpy as jnp
from jax.experimental import pallas as pl
from jax.experimental.pallas import tpu as pltpu


# ---------------------------------------------------------------------------
# tiling helper
# ---------------------------------------------------------------------------
def _tile(dim, target, align):
    """Block size for `dim`: the full dim if <= target, else the largest
    divisor of `dim` that is a multiple of `align` and <= target."""
    if dim <= target:
        return dim
    t = (target // align) * align
    while t >= align:
        if dim % t == 0:
            return t
        t -= align
    # TODO(synk): pad awkward dims in the wrapper (pl.cdiv grid + edge mask)
    # instead of falling back to the full, possibly VMEM-busting, dimension.
    return dim


# ---------------------------------------------------------------------------
# tiled matmul (+ bias, optional ReLU) -- bf16 operands, f32 accumulation
# ---------------------------------------------------------------------------
def _matmul_bias_kernel(x_ref, w_ref, b_ref, o_ref, acc_ref, *, activation):
    k = pl.program_id(2)

    @pl.when(k == 0)
    def _():
        acc_ref[...] = jnp.zeros_like(acc_ref)

    acc_ref[...] += jnp.dot(x_ref[...], w_ref[...],
                            preferred_element_type=jnp.float32)

    @pl.when(k == pl.num_programs(2) - 1)
    def _():
        y = acc_ref[...] + b_ref[...].astype(jnp.float32)
        if activation == "relu":
            y = jnp.maximum(y, 0.0)
        o_ref[...] = y.astype(o_ref.dtype)


def linear(x, w, b, activation=None, tm_target=512, tn_target=512,
           tk_target=512):
    """x: (M, K), w: (K, N), b: (N,) -> (M, N), tiled & pipelined."""
    M, K = x.shape
    N = w.shape[1]
    tm = _tile(M, tm_target, 16)     # bf16 packs 16 sublanes / vreg
    tn = _tile(N, tn_target, 128)
    tk = _tile(K, tk_target, 128)
    grid = (M // tm, N // tn, K // tk)
    return pl.pallas_call(
        functools.partial(_matmul_bias_kernel, activation=activation),
        grid=grid,
        in_specs=[
            pl.BlockSpec((tm, tk), lambda i, j, k: (i, k)),
            pl.BlockSpec((tk, tn), lambda i, j, k: (k, j)),
            pl.BlockSpec((1, tn), lambda i, j, k: (0, j)),
        ],
        out_specs=pl.BlockSpec((tm, tn), lambda i, j, k: (i, j)),
        out_shape=jax.ShapeDtypeStruct((M, N), x.dtype),
        scratch_shapes=[pltpu.VMEM((tm, tn), jnp.float32)],
        compiler_params=pltpu.CompilerParams(
            dimension_semantics=("parallel", "parallel", "arbitrary")),
    )(x, w, b.reshape(1, N))


# ---------------------------------------------------------------------------
# tiled matmul with fused bias + residual add + LayerNorm epilogue
# (LayerNorm needs the full output row, so N is not tiled here)
# ---------------------------------------------------------------------------
def _matmul_add_ln_kernel(x_ref, w_ref, b_ref, r_ref, g_ref, bt_ref, o_ref,
                          acc_ref, *, eps):
    k = pl.program_id(1)

    @pl.when(k == 0)
    def _():
        acc_ref[...] = jnp.zeros_like(acc_ref)

    acc_ref[...] += jnp.dot(x_ref[...], w_ref[...],
                            preferred_element_type=jnp.float32)

    @pl.when(k == pl.num_programs(1) - 1)
    def _():
        y = (acc_ref[...] + b_ref[...].astype(jnp.float32)
             + r_ref[...].astype(jnp.float32))
        mean = jnp.mean(y, axis=-1, keepdims=True)
        var = jnp.mean((y - mean) ** 2, axis=-1, keepdims=True)
        y = (y - mean) * jax.lax.rsqrt(var + eps)
        o_ref[...] = (y * g_ref[...].astype(jnp.float32)
                      + bt_ref[...].astype(jnp.float32)).astype(o_ref.dtype)


def linear_add_layernorm(x, w, b, residual, gamma, beta, eps=1e-12,
                         tm_target=256, tk_target=256):
    """layernorm(x @ w + b + residual) * gamma + beta, fused in one kernel."""
    M, K = x.shape
    N = w.shape[1]
    tm = _tile(M, tm_target, 16)
    tk = _tile(K, tk_target, 128)
    grid = (M // tm, K // tk)
    return pl.pallas_call(
        functools.partial(_matmul_add_ln_kernel, eps=eps),
        grid=grid,
        in_specs=[
            pl.BlockSpec((tm, tk), lambda i, k: (i, k)),
            pl.BlockSpec((tk, N), lambda i, k: (k, 0)),
            pl.BlockSpec((1, N), lambda i, k: (0, 0)),
            pl.BlockSpec((tm, N), lambda i, k: (i, 0)),
            pl.BlockSpec((1, N), lambda i, k: (0, 0)),
            pl.BlockSpec((1, N), lambda i, k: (0, 0)),
        ],
        out_specs=pl.BlockSpec((tm, N), lambda i, k: (i, 0)),
        out_shape=jax.ShapeDtypeStruct((M, N), x.dtype),
        scratch_shapes=[pltpu.VMEM((tm, N), jnp.float32)],
        compiler_params=pltpu.CompilerParams(
            dimension_semantics=("parallel", "arbitrary"),
            vmem_limit_bytes=32 * 1024 * 1024),
    )(x, w, b.reshape(1, N), residual, gamma.reshape(1, N),
      beta.reshape(1, N))


# ---------------------------------------------------------------------------
# flash-style multi-head attention: grid (B, H, Sq_tiles, Sk_tiles),
# running max/sum/acc in VMEM scratch, bf16 MXU operands, f32 softmax.
# ---------------------------------------------------------------------------
def _flash_attn_kernel(q_ref, k_ref, v_ref, *rest, scale, causal, has_mask):
    if has_mask:
        m_ref, o_ref, m_sc, l_sc, acc_sc = rest
    else:
        o_ref, m_sc, l_sc, acc_sc = rest
        m_ref = None

    qi = pl.program_id(2)
    ki = pl.program_id(3)
    tq = q_ref.shape[2]
    tk = k_ref.shape[2]

    @pl.when(ki == 0)
    def _():
        m_sc[...] = jnp.full_like(m_sc, -jnp.inf)
        l_sc[...] = jnp.zeros_like(l_sc)
        acc_sc[...] = jnp.zeros_like(acc_sc)

    def compute():
        q = q_ref[0, 0]                              # (tq, dh) bf16
        k = k_ref[0, 0]                              # (tk, dh) bf16
        v = v_ref[0, 0]                              # (tk, dh) bf16
        # contract the head dim of K directly (no in-kernel transpose)
        s = jax.lax.dot_general(q, k, (((1,), (1,)), ((), ())),
                                preferred_element_type=jnp.float32) * scale
        if causal:
            row = qi * tq + jax.lax.broadcasted_iota(jnp.int32, (tq, tk), 0)
            col = ki * tk + jax.lax.broadcasted_iota(jnp.int32, (tq, tk), 1)
            s = jnp.where(row >= col, s, -10000.0)   # matches reference fill
        if has_mask:
            keep = m_ref[0].astype(jnp.float32) != 0.0
            s = jnp.where(keep, s, -10000.0)
        m_prev = m_sc[...]                           # (tq, 1) f32
        m_new = jnp.maximum(m_prev, jnp.max(s, axis=-1, keepdims=True))
        alpha = jnp.exp(m_prev - m_new)
        p = jnp.exp(s - m_new)
        l_sc[...] = alpha * l_sc[...] + jnp.sum(p, axis=-1, keepdims=True)
        acc_sc[...] = alpha * acc_sc[...] + jnp.dot(
            p.astype(v.dtype), v, preferred_element_type=jnp.float32)
        m_sc[...] = m_new

    if causal:
        # skip tiles that are entirely above the diagonal
        @pl.when(qi * tq + (tq - 1) >= ki * tk)
        def _():
            compute()
    else:
        compute()

    @pl.when(ki == pl.num_programs(3) - 1)
    def _():
        o_ref[0, 0] = (acc_sc[...] / l_sc[...]).astype(o_ref.dtype)


def flash_attention(q, k, v, mask=None, *, causal=False,
                    tq_target=128, tk_target=128):
    """q: (B, H, Sq, dh), k/v: (B, H, Sk, dh), mask: (B, Sq, Sk) int8 or None.
    Returns (B, H, Sq, dh) in q.dtype."""
    B, H, Sq, dh = q.shape
    Sk = k.shape[2]
    scale = 1.0 / math.sqrt(dh)
    tq = _tile(Sq, tq_target, 32)    # 32-sublane alignment also covers int8 mask
    tk = _tile(Sk, tk_target, 128)
    grid = (B, H, Sq // tq, Sk // tk)

    in_specs = [
        pl.BlockSpec((1, 1, tq, dh), lambda b, h, qi, ki: (b, h, qi, 0)),
        pl.BlockSpec((1, 1, tk, dh), lambda b, h, qi, ki: (b, h, ki, 0)),
        pl.BlockSpec((1, 1, tk, dh), lambda b, h, qi, ki: (b, h, ki, 0)),
    ]
    args = [q, k, v]
    if mask is not None:
        in_specs.append(
            pl.BlockSpec((1, tq, tk), lambda b, h, qi, ki: (b, qi, ki)))
        args.append(mask)

    kernel = functools.partial(_flash_attn_kernel, scale=scale, causal=causal,
                               has_mask=mask is not None)
    return pl.pallas_call(
        kernel,
        grid=grid,
        in_specs=in_specs,
        out_specs=pl.BlockSpec((1, 1, tq, dh),
                               lambda b, h, qi, ki: (b, h, qi, 0)),
        out_shape=jax.ShapeDtypeStruct((B, H, Sq, dh), q.dtype),
        scratch_shapes=[pltpu.VMEM((tq, 1), jnp.float32),
                        pltpu.VMEM((tq, 1), jnp.float32),
                        pltpu.VMEM((tq, dh), jnp.float32)],
        compiler_params=pltpu.CompilerParams(
            dimension_semantics=("parallel", "parallel", "parallel",
                                 "arbitrary")),
    )(*args)


# ---------------------------------------------------------------------------
# head split / merge (cheap XLA reshapes/transposes in the wrapper)
# ---------------------------------------------------------------------------
def _split_heads(x2, B, S, H):
    """(B*S, D) -> (B, H, S, dh)."""
    D = x2.shape[-1]
    return x2.reshape(B, S, H, D // H).transpose(0, 2, 1, 3)


def _merge_heads(x):
    """(B, H, S, dh) -> (B*S, D)."""
    B, H, S, dh = x.shape
    return x.transpose(0, 2, 1, 3).reshape(B * S, H * dh)


# ---------------------------------------------------------------------------
# decoder layer (all dropouts are identity at inference)
# ---------------------------------------------------------------------------
def decoder_layer(dec, enc, t_mask, s_mask, params, n_head,
                  self_attn_causal=True, compute_dtype=jnp.bfloat16):
    B, S, D = dec.shape
    assert D % n_head == 0
    cdt = compute_dtype
    dec2 = dec.reshape(B * S, D).astype(cdt)

    # --- self-attention block ---------------------------------------------
    p1 = params["attn1"]
    qkv = linear(dec2, p1["wqkv"].astype(cdt), p1["bqkv"])        # (B*S, 3D)
    q = _split_heads(qkv[:, :D], B, S, n_head)
    k = _split_heads(qkv[:, D:2 * D], B, S, n_head)
    v = _split_heads(qkv[:, 2 * D:], B, S, n_head)
    if self_attn_causal:
        ctx = flash_attention(q, k, v, mask=None, causal=True)
    else:
        tm_i8 = (t_mask.reshape(B, S, S) != 0).astype(jnp.int8)
        ctx = flash_attention(q, k, v, mask=tm_i8, causal=False)
    # output projection + residual(dec) + LayerNorm1, fused epilogue
    x2 = linear_add_layernorm(_merge_heads(ctx), p1["wo"].astype(cdt),
                              p1["bo"], dec2,
                              params["ln1_g"], params["ln1_b"])

    # --- cross-attention block ----------------------------------------------
    if enc is not None:
        Se = enc.shape[1]
        enc2 = enc.reshape(B * Se, D).astype(cdt)
        pc = params["cross"]
        q = _split_heads(linear(x2, pc["wq"].astype(cdt), pc["bq"]),
                         B, S, n_head)
        kv = linear(enc2, pc["wkv"].astype(cdt), pc["bkv"])       # (B*Se, 2D)
        k = _split_heads(kv[:, :D], B, Se, n_head)
        v = _split_heads(kv[:, D:], B, Se, n_head)
        sm_i8 = (s_mask.reshape(B, S, Se) != 0).astype(jnp.int8)
        ctx = flash_attention(q, k, v, mask=sm_i8, causal=False)
        x2 = linear_add_layernorm(_merge_heads(ctx), pc["wo"].astype(cdt),
                                  pc["bo"], x2,
                                  params["ln2_g"], params["ln2_b"])

    # --- position-wise FFN block --------------------------------------------
    h = linear(x2, params["ffn_w1"].astype(cdt), params["ffn_b1"],
               activation="relu")
    x2 = linear_add_layernorm(h, params["ffn_w2"].astype(cdt),
                              params["ffn_b2"], x2,
                              params["ln3_g"], params["ln3_b"])
    return x2.reshape(B, S, D).astype(dec.dtype)


# ---------------------------------------------------------------------------
# deterministic parameter construction (QKV / KV weights pre-fused)
# ---------------------------------------------------------------------------
def make_params(key, d_model, ffn_hidden):
    keys = jax.random.split(key, 12)
    it = iter(keys)

    def w(din, dout):
        return (jax.random.normal(next(it), (din, dout), jnp.float32)
                * (1.0 / math.sqrt(din)))

    return {
        "attn1": {
            "wqkv": jnp.concatenate([w(d_model, d_model) for _ in range(3)],
                                    axis=1),
            "bqkv": jnp.zeros((3 * d_model,), jnp.float32),
            "wo": w(d_model, d_model),
            "bo": jnp.zeros((d_model,), jnp.float32),
        },
        "cross": {
            "wq": w(d_model, d_model),
            "bq": jnp.zeros((d_model,), jnp.float32),
            "wkv": jnp.concatenate([w(d_model, d_model) for _ in range(2)],
                                   axis=1),
            "bkv": jnp.zeros((2 * d_model,), jnp.float32),
            "wo": w(d_model, d_model),
            "bo": jnp.zeros((d_model,), jnp.float32),
        },
        "ln1_g": jnp.ones((d_model,), jnp.float32),
        "ln1_b": jnp.zeros((d_model,), jnp.float32),
        "ln2_g": jnp.ones((d_model,), jnp.float32),
        "ln2_b": jnp.zeros((d_model,), jnp.float32),
        "ln3_g": jnp.ones((d_model,), jnp.float32),
        "ln3_b": jnp.zeros((d_model,), jnp.float32),
        "ffn_w1": w(d_model, ffn_hidden),
        "ffn_b1": jnp.zeros((ffn_hidden,), jnp.float32),
        "ffn_w2": w(ffn_hidden, d_model),
        "ffn_b2": jnp.zeros((d_model,), jnp.float32),
    }


if __name__ == "__main__":
    B, S, D, H, FFN = 2, 8, 32, 4, 64
    key = jax.random.PRNGKey(0)
    k_dec, k_enc, k_par = jax.random.split(key, 3)

    dec = jax.random.normal(k_dec, (B, S, D), jnp.float32)
    enc = jax.random.normal(k_enc, (B, S, D), jnp.float32)

    # causal target mask is generated in-kernel (self_attn_causal=True);
    # full (all-ones) source mask for the cross-attention path.
    s_mask = jnp.ones((B, 1, S, S), jnp.float32)

    params = make_params(k_par, D, FFN)

    out = decoder_layer(dec, enc, None, s_mask, params, n_head=H,
                        self_attn_causal=True)
    out = jax.block_until_ready(out)
    assert out.shape == (B, S, D)
    assert jnp.all(jnp.isfinite(out))
    print("KERNEL_OK")
</pallas_src>

<mosaic_0001>
module attributes {stable_mosaic.version = 11 : i64} {
  func.func @_matmul_bias_kernel(%arg0: i32, %arg1: i32, %arg2: i32, %arg3: memref<16x32xbf16, #tpu.memory_space<vmem>>, %arg4: memref<32x96xbf16, #tpu.memory_space<vmem>>, %arg5: memref<1x96xf32, #tpu.memory_space<vmem>>, %arg6: memref<16x96xbf16, #tpu.memory_space<vmem>>, %arg7: memref<16x96xf32, #tpu.memory_space<vmem>>) attributes {dimension_semantics = [#tpu.dimension_semantics<parallel>, #tpu.dimension_semantics<parallel>, #tpu.dimension_semantics<arbitrary>], iteration_bounds = array<i64: 1, 1, 1>, scalar_prefetch = 0 : i64, scratch_operands = 1 : i64, tpu.core_type = #tpu.core_type<tc>, window_params = [{transform_indices = @transform_0, window_bounds = array<i64: 16, 32>}, {transform_indices = @transform_1, window_bounds = array<i64: 32, 96>}, {transform_indices = @transform_2, window_bounds = array<i64: 1, 96>}, {transform_indices = @transform_3, window_bounds = array<i64: 16, 96>}]} {
    %c0_i32 = arith.constant 0 : i32
    %0 = arith.cmpi eq, %arg2, %c0_i32 : i32
    %1 = arith.extui %0 : i1 to i32
    %c0_i32_0 = arith.constant 0 : i32
    %2 = arith.cmpi ne, %1, %c0_i32_0 : i32
    scf.if %2 {
      %cst_10 = arith.constant 0.000000e+00 : f32
      %12 = vector.broadcast %cst_10 : f32 to vector<16x96xf32>
      %c0_11 = arith.constant 0 : index
      %c0_12 = arith.constant 0 : index
      %13 = vector.load %arg7[%c0_11, %c0_12] : memref<16x96xf32, #tpu.memory_space<vmem>>, vector<16x96xf32>
      tpu.vector_store %arg7[%c0_11, %c0_12], %12 {strides = array<i32>} : memref<16x96xf32, #tpu.memory_space<vmem>>, vector<16x96xf32>,
    } else {
    }
    %c0 = arith.constant 0 : index
    %c0_1 = arith.constant 0 : index
    %3 = vector.load %arg7[%c0, %c0_1] : memref<16x96xf32, #tpu.memory_space<vmem>>, vector<16x96xf32>
    %c0_2 = arith.constant 0 : index
    %c0_3 = arith.constant 0 : index
    %4 = vector.load %arg3[%c0_2, %c0_3] : memref<16x32xbf16, #tpu.memory_space<vmem>>, vector<16x32xbf16>
    %c0_4 = arith.constant 0 : index
    %c0_5 = arith.constant 0 : index
    %5 = vector.load %arg4[%c0_4, %c0_5] : memref<32x96xbf16, #tpu.memory_space<vmem>>, vector<32x96xbf16>
    %cst = arith.constant dense<0.000000e+00> : vector<16x96xf32>
    %6 = tpu.matmul %4, %5, %cst {dimension_numbers = #tpu.dot_dimension_numbers<[1], [0], [0], [1], [0, 0, 1, 1], [], []>} : vector<16x32xbf16>, vector<32x96xbf16>, vector<16x96xf32> -> vector<16x96xf32>
    %7 = arith.addf %3, %6 : vector<16x96xf32>
    %c0_6 = arith.constant 0 : index
    %c0_7 = arith.constant 0 : index
    %8 = vector.load %arg7[%c0_6, %c0_7] : memref<16x96xf32, #tpu.memory_space<vmem>>, vector<16x96xf32>
    tpu.vector_store %arg7[%c0_6, %c0_7], %7 {strides = array<i32>} : memref<16x96xf32, #tpu.memory_space<vmem>>, vector<16x96xf32>,
    %c0_i32_8 = arith.constant 0 : i32
    %9 = arith.cmpi eq, %arg2, %c0_i32_8 : i32
    %10 = arith.extui %9 : i1 to i32
    %c0_i32_9 = arith.constant 0 : i32
    %11 = arith.cmpi ne, %10, %c0_i32_9 : i32
    scf.if %11 {
      %c0_10 = arith.constant 0 : index
      %c0_11 = arith.constant 0 : index
      %12 = vector.load %arg7[%c0_10, %c0_11] : memref<16x96xf32, #tpu.memory_space<vmem>>, vector<16x96xf32>
      %c0_12 = arith.constant 0 : index
      %c0_13 = arith.constant 0 : index
      %13 = vector.load %arg5[%c0_12, %c0_13] : memref<1x96xf32, #tpu.memory_space<vmem>>, vector<1x96xf32>
      %14 = vector.broadcast %13 : vector<1x96xf32> to vector<16x96xf32>
      %15 = arith.addf %12, %14 : vector<16x96xf32>
      %16 = arith.truncf %15 : vector<16x96xf32> to vector<16x96xbf16>
      %c0_14 = arith.constant 0 : index
      %c0_15 = arith.constant 0 : index
      %17 = vector.load %arg6[%c0_14, %c0_15] : memref<16x96xbf16, #tpu.memory_space<vmem>>, vector<16x96xbf16>
      tpu.vector_store %arg6[%c0_14, %c0_15], %16 {strides = array<i32>} : memref<16x96xbf16, #tpu.memory_space<vmem>>, vector<16x96xbf16>,
    } else {
    }
    return
  }
  func.func @transform_0(%arg0: i32, %arg1: i32, %arg2: i32) -> (i32, i32) {
    %c0_i32 = arith.constant 0 : i32
    return %arg0, %arg2 : i32, i32
  }
  func.func @transform_1(%arg0: i32, %arg1: i32, %arg2: i32) -> (i32, i32) {
    %c0_i32 = arith.constant 0 : i32
    return %arg2, %arg1 : i32, i32
  }
  func.func @transform_2(%arg0: i32, %arg1: i32, %arg2: i32) -> (i32, i32) {
    %c0_i32 = arith.constant 0 : i32
    %c0_i32_0 = arith.constant 0 : i32
    return %c0_i32, %arg1 : i32, i32
  }
  func.func @transform_3(%arg0: i32, %arg1: i32, %arg2: i32) -> (i32, i32) {
    %c0_i32 = arith.constant 0 : i32
    return %arg0, %arg1 : i32, i32
  }
}

</mosaic_0001>

<bundles_post_ra>
// kernel: tpu_custom_call.1
= control target key start
LH: loop header
LB: loop body
LE: loop exit
PB: predicated region body
PF: predicated region fallthrough
CT: control target
= control target key end

     0   :  { %8 = vsyncpa [#allocation4], 0  ;;  %s350_s0 = inlined_call_operand.hbm [shape: bf16[16,32], index: 0, kind: input, shape index: {}]   ;;  %s351_s1 = inlined_call_operand.hbm [shape: bf16[32,96], index: 1, kind: input, shape index: {}]   ;;  %s352_s2 = inlined_call_operand.vmem [shape: f32[1,96], index: 2, kind: input, shape index: {}]   ;;  %s353_s3 = inlined_call_operand.hbm [shape: bf16[16,96], index: 3, kind: output, shape index: {}]  }
   0x1   :  { %9 = vsyncpa [#allocation7], 0 }
   0x2   :  { %10 = vsyncpa [#allocation5], 0  ;;  %s271_s12 = smov [#allocation3]   ;;  %s199_s16 = scalar_lea.hbm %s350_s0, 128 }
   0x3   :  { %s16_s13 = sshll.u32 %s271_s12, 4  ;;  %p200_p0 = scmp.ne.s32.totalorder %s350_s0, %s199_s16  ;;  %s17_s13 = int_to_ptr.vmem [resolvable:$true] %s16_s13 }
   0x4   :  { %p203_p1 = scmp.lt.u32.totalorder %s199_s16, %s350_s0 }
   0x6   :  { %p205_p2 = pnand %p203_p1, %p200_p0 }
   0x8   :  { %208 = shalt.err (!%p205_p2)
}
   0x9   :  { %s209_s21 = scalar_lea.vmem %s17_s13, 128  ;;  %p214_p4 = scmp.lt.s32.totalorder %s17_s13, %s17_s13 }
   0xa   :  { %p210_p3 = scmp.ne.s32.totalorder %s17_s13, %s209_s21  ;;  %p215_p5 = scmp.lt.s32.totalorder %s209_s21, %s209_s21 }
   0xc   :  { %p216_p6 = por %p215_p5, %p214_p4 }
   0xe   :  { %p217_p7 = pnand %p216_p6, %p210_p3 }
  0x10   :  { %220 = shalt.err (!%p217_p7)
}
  0x11   :  { %s272_s22 = smov 64   ;;  %s273_s23 = smov 4  }
  0x12   :  { %22 = dma.hbm_to_vmem [thread:$0]  %s350_s0, 128, %s17_s13, [#allocation4], %s272_s22, %s272_s22, %s273_s23  }
  0x13   :  { %s274_s26 = smov [#allocation6]   ;;  %s221_s30 = scalar_lea.hbm %s351_s1, 256 }
  0x14   :  { %s28_s27 = sshll.u32 %s274_s26, 4  ;;  %p222_p8 = scmp.ne.s32.totalorder %s351_s1, %s221_s30  ;;  %s29_s27 = int_to_ptr.vmem [resolvable:$true] %s28_s27 }
  0x15   :  { %p225_p9 = scmp.lt.u32.totalorder %s221_s30, %s351_s1 }
  0x17   :  { %p227_p10 = pnand %p225_p9, %p222_p8 }
  0x19   :  { %230 = shalt.err (!%p227_p10)
}
  0x1a   :  { %s231_s8 = scalar_lea.vmem %s29_s27, 256  ;;  %p236_p12 = scmp.lt.s32.totalorder %s29_s27, %s29_s27 }
  0x1b   :  { %p232_p11 = scmp.ne.s32.totalorder %s29_s27, %s231_s8  ;;  %p237_p13 = scmp.lt.s32.totalorder %s231_s8, %s231_s8 }
  0x1d   :  { %p238_p0 = por %p237_p13, %p236_p12 }
  0x1f   :  { %p239_p1 = pnand %p238_p0, %p232_p11 }
  0x21   :  { %242 = shalt.err (!%p239_p1)
}
  0x22   :  { %34 = dma.hbm_to_vmem [thread:$0]  %s351_s1, 256, %s29_s27, [#allocation7], %s272_s22, %s272_s22, %s273_s23  }
  0x23   :  { %265 = dma.done.wait [#allocation4], 128  }
  0x24   :  { %266 = vsyncadd [#allocation4], 4294967168 }
  0x25   :  { %267 = dma.done.wait [#allocation7], 256  }
  0x26   :  { %268 = vsyncadd [#allocation7], 4294967040  ;;  %vm48_vm0 = vcmask 785408   ;;  %v275_v0 = vmov 0.0   ;;  %vm276_vm1 = vmmov 0   ;;  %v196_v1 = vld [vmem:[#allocation6] sm:$0xff]  }
  0x27   :  { %49 = vst.msk [vmem:[#allocation2] sm:$0xff] %vm48_vm0, %v275_v0  ;;  %50 = vst.msk [vmem:[#allocation2 + $0x8] sm:$0xff] %vm48_vm0, %v275_v0  ;;  %181 = vmatprep.subr.bf16.mxu0 %v275_v0  ;;  %185 = vmatprep.mubr.msk.bf16.mxu0 %vm276_vm1, %v275_v0  ;;  %v197_v2 = vld [vmem:[#allocation6 + $0x8] sm:$0xff]   ;;  %v198_v3 = vld [vmem:[#allocation3] sm:$0xff]   ;;  %vm76_vm2 = vcmask 261120   ;;  %vm148_vm3 = vcmask 781312  }
  0x28   :  { %182 = vmatpush3.bf16.msra.mxu0 %v196_v1  ;;  %v173_v12 = vld [vmem:[%s352_s2] ss:$0 sm:$0xff]  ;;  %s277_s11 = smov [#allocation8]  }
  0x29   :  { %183 = vmatprep.subr.bf16.mxu0 %v275_v0  ;;  %s156_s12 = sshll.u32 %s277_s11, 4  ;;  %s157_s12 = int_to_ptr.vmem [resolvable:$true] %s156_s12 }
  0x2a   :  { %s243_s13 = scalar_lea.vmem %s157_s12, 128  ;;  %p248_p3 = scmp.lt.s32.totalorder %s157_s12, %s157_s12 }
  0x2b   :  { %p244_p2 = scmp.ne.s32.totalorder %s157_s12, %s243_s13  ;;  %p249_p4 = scmp.lt.s32.totalorder %s243_s13, %s243_s13 }
  0x2c   :  { %184 = vmatpush3.bf16.msra.mxu0 %v197_v2 }
  0x2d   :  { %p250_p5 = por %p249_p4, %p248_p3 }
  0x2e   :  { %v51_v4 = vld [vmem:[#allocation2] sm:$0xff]  ;;  %v52_v6 = vld [vmem:[#allocation2 + $0x8] sm:$0xff] }
  0x2f   :  { %186 = vmatmul.mubr.msk.bf16.vlgmr.msra.gmra.mrb[0].mxu0 %vm76_vm2, %v198_v3  ;;  %p251_p6 = pnand %p250_p5, %p244_p2 }
 0x102   :  { %v114_v5 = vpop.f32.mrb[0].mxu0 }
 0x103   :  { %v121_v7 = vadd.f32 %v114_v5, %v51_v4  ;;  %v187_v8 = vpop.f32.mrb[1].mxu0 }
 0x104   :  { %v117_v9 = vpop.f32.mrb[2].mxu0 }
 0x105   :  { %124 = vst.msk [vmem:[#allocation2] sm:$0xff] %vm48_vm0, %v121_v7  ;;  %v122_v10 = vadd.f32 %v117_v9, %v52_v6  ;;  %v188_v11 = vpop.f32.mrb[3].mxu0 }
 0x107   :  { %125 = vst.msk [vmem:[#allocation2 + $0x8] sm:$0xff] %vm48_vm0, %v122_v10 }
 0x10c   :  { %v129_v13 = vld [vmem:[#allocation2] sm:$0xff] }
 0x10d   :  { %v138_v14 = vadd.f32 %v173_v12, %v129_v13 }
 0x10e   :  { %v130_v15 = vld [vmem:[#allocation2 + $0x8] sm:$0xff] }
 0x10f   :  { %v139_v16 = vadd.f32 %v173_v12, %v130_v15  ;;  %v176_v17 = vpack.c.bf16 %v138_v14, %v138_v14 }
 0x111   :  { %v177_v18 = vpack.c.bf16 %v139_v16, %v139_v16  ;;  %149 = vst.msk [vmem:[#allocation8] sm:$0xf] %vm148_vm3, %v176_v17 }
 0x113   :  { %150 = vst.msk [vmem:[#allocation8 + $0x4] sm:$0xf] %vm148_vm3, %v177_v18 }
 0x114   :  { %254 = shalt.err (!%p251_p6)
}
 0x115   :  { %s255_s15 = scalar_lea.hbm %s353_s3, 128 }
 0x116   :  { %p256_p7 = scmp.ne.s32.totalorder %s353_s3, %s255_s15  ;;  %p259_p8 = scmp.lt.u32.totalorder %s255_s15, %s353_s3 }
 0x118   :  { %p261_p9 = pnand %p259_p8, %p256_p7 }
 0x11a   :  { %264 = shalt.err (!%p261_p9)
}
 0x11b   :  { %162 = dma.vmem_to_hbm [thread:$0]  %s157_s12, 128, %s353_s3, [#allocation5], %s272_s22, %s272_s22, %s273_s23  }
 0x11c   :  { %269 = dma.done.wait [#allocation5], 128  }
 0x11d   :  { %270 = vsyncadd [#allocation5], 4294967168 }
 0x11e   :  { %166 = vsyncpa [#allocation4], 1 }
 0x11f   :  { %167 = vsyncpa [#allocation7], 1 }
 0x120   :  { %168 = vsyncpa [#allocation5], 1 }

</bundles_post_ra>
